<compile_context>
chip_gen: v7x
topology: tpu7x:2x2x1
jax: 0.10.0
libtpu: 0.0.40
codegen_flags: <defaults>
</compile_context>

<pallas_src>
import functools

import jax
import jax.numpy as jnp
from jax.experimental import pallas as pl
from jax.experimental.pallas import tpu as pltpu


def _round_up(x, m):
    return (x + m - 1) // m * m


# ---------------------------------------------------------------------------
# pltpu.roll convention probe (one tiny kernel, run once, outside jit).
# The fused kernel needs lane_shift(x, k)[d] == x[d + k]; this detects whether
# roll follows numpy semantics (result[i] = x[i - shift]).
# ---------------------------------------------------------------------------
@functools.lru_cache(maxsize=None)
def _roll_is_numpy_convention() -> bool:
    def probe(x_ref, o_ref):
        o_ref[...] = pltpu.roll(x_ref[...], 1, 1)

    x = jnp.arange(128, dtype=jnp.float32).reshape(1, 128)
    y = pl.pallas_call(
        probe, out_shape=jax.ShapeDtypeStruct((1, 128), jnp.float32))(x)
    return bool(y[0, 1] == x[0, 0])


# ---------------------------------------------------------------------------
# Fused kernel: the whole 3-conv + FC network for a block of B images.
# ---------------------------------------------------------------------------
def _make_fused_kernel(B, L1, L2C, WP1, roll_numpy):
    """B: images per grid step; L1: padded flat size of the 34x34 grid (1280);
       L2C: compact 16x16 flat size (256); WP1: padded side (34)."""

    def lane_shift(x, k):
        # y[:, d] = x[:, (d + k) mod Ltot].  Out-of-image reads land either in
        # a neighbouring image's zero tail or in columns that are always
        # masked / never selected (verified per layer below).
        L = x.shape[-1]
        s = (-k) % L if roll_numpy else k % L
        if s == 0:
            return x
        return pltpu.roll(x, s, 1)

    def kernel(x_ref, w0_ref, b0_ref, w1_ref, b1_ref, w2_ref, b2_ref,
               mask1_ref, s1_ref, mask2_ref, h_ref, md_ref, g_ref, bfc_ref,
               out_ref, rsum_ref):
        f32, bf16 = jnp.float32, jnp.bfloat16
        x = x_ref[0]                                   # (8, B*L1) bf16

        # ---- layer 0: 3x3, stride 1, pad 1 (+ bias, ReLU) ------------------
        # dest-anchored taps: output column d reads x[d + (i-1)*34 + (j-1)]
        taps0 = jnp.concatenate(
            [lane_shift(x, i * WP1 + j - (WP1 + 1))
             for i in range(3) for j in range(3)], axis=0)       # (72, B*L1)
        a1 = jnp.maximum(
            jnp.dot(w0_ref[...], taps0, preferred_element_type=f32)
            + b0_ref[...], 0.0)
        # bf16 once, then mask: zero ring + zero tail = padding for layer 1
        a1 = a1.astype(bf16) * mask1_ref[...]                    # (8, B*L1)

        # ---- layer 1: 3x3, stride 2, pad 1 (+ bias, ReLU), dense anchors ---
        taps1 = jnp.concatenate(
            [lane_shift(a1, i * WP1 + j)
             for i in range(3) for j in range(3)], axis=0)       # (72, B*L1)
        z1 = jnp.maximum(
            jnp.dot(w1_ref[...], taps1, preferred_element_type=f32)
            + b1_ref[...], 0.0).astype(bf16)                     # (16, B*L1)

        # ---- stride-2 gather -> compact 16x16 layout (per-image matmul) ----
        # contraction over the image's own 1280 lanes; trimmed to 256 outputs
        s1m = s1_ref[...]                                        # (1280, 256)
        a2 = jnp.concatenate(
            [jnp.dot(z1[:, b * L1:(b + 1) * L1], s1m,
                     preferred_element_type=f32).astype(bf16)
             for b in range(B)], axis=1)                         # (16, B*256)

        # ---- layer 2: 3x3, stride 2, pad 1 on the compact grid -------------
        # boundary handling via exact per-tap 0/1 masks (no padding ring).
        m2 = mask2_ref[...]                                      # (9, B*256)
        taps2 = jnp.concatenate(
            [lane_shift(a2, (i - 1) * 16 + (j - 1))
             * m2[3 * i + j:3 * i + j + 1, :]
             for i in range(3) for j in range(3)], axis=0)       # (144,B*256)
        z2 = jnp.maximum(
            jnp.dot(w2_ref[...], taps2, preferred_element_type=f32)
            + b2_ref[...], 0.0).astype(bf16)                     # (32, B*256)

        # ---- fc: PyTorch x.view(N,-1) @ fc_w + fc_b ------------------------
        # NCHW flatten + layer-2 stride-2 anchoring folded into the scattered
        # fc weight `h`; diagonal mask + one batched selector matmul.
        hm = h_ref[...]                                          # (256, 320)
        md = md_ref[...]                                         # (32, 320)
        for b in range(B):
            r = jnp.dot(z2[:, b * L2C:(b + 1) * L2C], hm,
                        preferred_element_type=f32)              # (32, 320)
            rsum_ref[pl.ds(b, 1), :] = jnp.sum(r * md, axis=0, keepdims=True)
        logits = jnp.dot(rsum_ref[...], g_ref[...],
                         preferred_element_type=f32) + bfc_ref[...]
        out_ref[...] = logits                                    # (B, 128)

    return kernel


# ---------------------------------------------------------------------------
# Forward pass wrapper (layout prep is tiny one-time XLA work on the params).
# ---------------------------------------------------------------------------
def convn_forward(x_nchw, params, *, block_b=8, roll_numpy=True):
    f32, bf16 = jnp.float32, jnp.bfloat16
    (w0, b0), (w1, b1), (w2, b2) = params["layers"]
    fc_w, fc_b = params["fc_w"], params["fc_b"]

    N, CIN, H0, W0s = x_nchw.shape
    assert (CIN, H0, W0s) == (3, 32, 32)        # fc dims hard-code 32x32 input
    C1, C2, C3 = w0.shape[0], w1.shape[0], w2.shape[0]       # 8, 16, 32
    K = fc_b.shape[0]                                         # 10
    H2, H3 = H0 // 2, H0 // 4                                 # 16, 8
    assert fc_w.shape == (C3 * H3 * H3, K)

    B = block_b
    assert B % 8 == 0, "images-per-step must be a multiple of 8 (sublanes)"
    WP1 = H0 + 2                     # padded side of layer-0/1 inputs (34)
    C0P = 8                          # pad 3 input channels -> 8 sublanes
    L1 = _round_up(WP1 * WP1, 128)   # 1280 flattened lanes per image
    L2C = H2 * H2                    # 256: compact 16x16 layer-2 input
    KPAD = 128                       # lane-dense padded logits width

    Nb = -(-N // B)                  # grid steps
    NP = Nb * B

    # ---- input: pad batch/channels/spatial ring, flatten, lane-concat B ----
    xp = jnp.pad(x_nchw.astype(f32),
                 ((0, NP - N), (0, C0P - CIN), (1, 1), (1, 1)))
    xf = jnp.pad(xp.reshape(NP, C0P, WP1 * WP1),
                 ((0, 0), (0, 0), (0, L1 - WP1 * WP1)))
    xg = (xf.reshape(Nb, B, C0P, L1).transpose(0, 2, 1, 3)
          .reshape(Nb, C0P, B * L1).astype(bf16))          # (Nb, 8, B*1280)

    # ---- conv weights: (co, ci, 3, 3) -> fused (co, 9*ci_pad), bf16 --------
    def fuse_w(w, ci_pad):
        co, ci = w.shape[0], w.shape[1]
        wt = jnp.transpose(w, (2, 3, 0, 1)).reshape(9, co, ci)   # [kk, co, ci]
        if ci < ci_pad:
            wt = jnp.pad(wt, ((0, 0), (0, 0), (0, ci_pad - ci)))
        return (jnp.transpose(wt, (1, 0, 2))
                .reshape(co, 9 * ci_pad).astype(bf16))

    w0f, w1f, w2f = fuse_w(w0, C0P), fuse_w(w1, C1), fuse_w(w2, C2)
    b0p = b0.reshape(C1, 1).astype(f32)
    b1p = b1.reshape(C2, 1).astype(f32)
    b2p = b2.reshape(C3, 1).astype(f32)
    bfcp = jnp.pad(fc_b.astype(f32), (0, KPAD - K)).reshape(1, KPAD)

    # ---- mask1: interior of the padded 34x34 grid, tiled per image ---------
    d = jnp.arange(L1)
    r, c = d // WP1, d % WP1
    m1 = ((d < WP1 * WP1) & (r >= 1) & (r <= H0) & (c >= 1) & (c <= H0))
    mask1 = jnp.tile(m1.astype(bf16)[None, :], (1, B))           # (1, B*L1)

    # ---- s1c: stride-2 anchor gather into the compact 16x16 layout ---------
    p = jnp.arange(L2C)
    src = 2 * (p // H2) * WP1 + 2 * (p % H2)                     # anchors<=1050
    s1c = (jnp.arange(L1)[:, None] == src[None, :]).astype(bf16)  # (1280, 256)

    # ---- mask2: per-tap validity on the compact (unpadded) 16x16 grid ------
    rr, cc = p // H2, p % H2
    m2_rows = []
    for i in range(3):
        for j in range(3):
            ok = ((rr + i - 1 >= 0) & (rr + i - 1 < H2)
                  & (cc + j - 1 >= 0) & (cc + j - 1 < H2))
            m2_rows.append(ok)
    mask2 = jnp.tile(jnp.stack(m2_rows).astype(bf16), (1, B))    # (9, B*256)

    # ---- fc weight scattered to layer-2 anchor lanes (folds last stride-2
    #      gather + PyTorch NCHW flatten); diag mask + padded column selector
    q = jnp.arange(H3 * H3)
    anchor = 2 * (q // H3) * H2 + 2 * (q % H3)                   # (64,)
    wr = fc_w.astype(f32).reshape(C3, H3 * H3, K)                # [c, p, k]
    h = jnp.zeros((L2C, C3, K), f32).at[anchor].set(
        jnp.transpose(wr, (1, 0, 2)))
    h = h.reshape(L2C, C3 * K).astype(bf16)                      # (256, 320)
    md = (jnp.arange(C3 * K)[None, :] // K
          == jnp.arange(C3)[:, None]).astype(f32)                # (32, 320)
    g = (jnp.arange(C3 * K)[:, None] % K
         == jnp.arange(KPAD)[None, :]).astype(f32)               # (320, 128)

    kernel = _make_fused_kernel(B, L1, L2C, WP1, roll_numpy)

    flops = 2 * NP * (9 * C0P * C1 * L1 + 9 * C1 * C2 * L1
                      + C2 * L1 * L2C + 9 * C2 * C3 * L2C
                      + C3 * L2C * C3 * K) + 2 * NP * C3 * K * KPAD
    bytes_accessed = int(xg.size * 2
                         + (w0f.size + w1f.size + w2f.size) * 2
                         + (b0p.size + b1p.size + b2p.size + bfcp.size) * 4
                         + mask1.size * 2 + s1c.size * 2 + mask2.size * 2
                         + h.size * 2 + md.size * 4 + g.size * 4
                         + NP * KPAD * 4)

    def full(shape):
        return pl.BlockSpec(shape, lambda n: (0,) * len(shape))

    out = pl.pallas_call(
        kernel,
        grid=(Nb,),
        out_shape=jax.ShapeDtypeStruct((NP, KPAD), f32),
        in_specs=[
            pl.BlockSpec((1, C0P, B * L1), lambda n: (n, 0, 0)),  # x block
            full((C1, 9 * C0P)), full((C1, 1)),                   # w0f, b0
            full((C2, 9 * C1)), full((C2, 1)),                    # w1f, b1
            full((C3, 9 * C2)), full((C3, 1)),                    # w2f, b2
            full((1, B * L1)),                                    # mask1
            full((L1, L2C)),                                      # s1c
            full((9, B * L2C)),                                   # mask2
            full((L2C, C3 * K)),                                  # h
            full((C3, C3 * K)),                                   # md
            full((C3 * K, KPAD)),                                 # g
            full((1, KPAD)),                                      # fc bias
        ],
        out_specs=pl.BlockSpec((B, KPAD), lambda n: (n, 0)),
        scratch_shapes=[pltpu.VMEM((B, C3 * K), jnp.float32)],    # rsum rows
        compiler_params=pltpu.CompilerParams(
            dimension_semantics=("parallel",)),
        cost_estimate=pl.CostEstimate(flops=int(flops), transcendentals=0,
                                      bytes_accessed=bytes_accessed),
    )(xg, w0f, b0p, w1f, b1p, w2f, b2p, mask1, s1c, mask2, h, md, g, bfcp)
    return out[:N, :K]


# ---------------------------------------------------------------------------
# Parameter init mirroring CONVN_WOBN.__init__ (num_layers=3 default).
# ---------------------------------------------------------------------------
def init_params(key, num_layers=3):
    cfgs = [(3, 8, 1)]
    stride, feature_map = 2, 32
    out_c = 8
    for i in range(1, num_layers):
        in_c = 8 * 2 ** (i - 1)
        out_c = 8 * 2 ** i
        if in_c >= 512:
            in_c, out_c = 512, 512
        if feature_map == 1:
            stride = 1
        else:
            feature_map //= 2
        cfgs.append((in_c, out_c, stride))

    layers = []
    for (ci, co, _st) in cfgs:
        key, k1, k2 = jax.random.split(key, 3)
        w = jax.random.normal(k1, (co, ci, 3, 3), jnp.float32) / jnp.sqrt(ci * 9.0)
        b = 0.01 * jax.random.normal(k2, (co,), jnp.float32)
        layers.append((w, b))

    fc_in = out_c * feature_map * feature_map
    key, k1, k2 = jax.random.split(key, 3)
    fc_w = jax.random.normal(k1, (fc_in, 10), jnp.float32) / jnp.sqrt(float(fc_in))
    fc_b = 0.01 * jax.random.normal(k2, (10,), jnp.float32)
    return {"layers": layers, "fc_w": fc_w, "fc_b": fc_b}


if __name__ == "__main__":
    key = jax.random.PRNGKey(0)
    kx, kp = jax.random.split(key)
    # the architecture (fc = 32 * 8 * 8) hard-codes a 32x32 spatial input;
    # 16 images / 8 per block -> 2 grid steps (feeds both v7x TensorCores).
    x = jax.random.normal(kx, (16, 3, 32, 32), jnp.float32)
    params = init_params(kp, num_layers=3)

    roll_numpy = _roll_is_numpy_convention()
    fwd = jax.jit(functools.partial(convn_forward, block_b=8,
                                    roll_numpy=roll_numpy))
    out = fwd(x, params)
    jax.block_until_ready(out)
    assert out.shape == (16, 10), out.shape
    print("KERNEL_OK")
</pallas_src>

<mosaic_0001>
module attributes {stable_mosaic.version = 11 : i64} {
  func.func @probe(%arg0: memref<1x128xf32, #tpu.memory_space<vmem>>, %arg1: memref<1x128xf32, #tpu.memory_space<vmem>>) attributes {dimension_semantics = [], scalar_prefetch = 0 : i64, scratch_operands = 0 : i64, tpu.core_type = #tpu.core_type<tc>} {
    %c0 = arith.constant 0 : index
    %c0_0 = arith.constant 0 : index
    %0 = vector.load %arg0[%c0, %c0_0] : memref<1x128xf32, #tpu.memory_space<vmem>>, vector<1x128xf32>
    %c1_i32 = arith.constant 1 : i32
    %1 = tpu.dynamic_rotate %0 by %c1_i32 dim 1 : vector<1x128xf32>, i32 -> vector<1x128xf32>
    %c0_1 = arith.constant 0 : index
    %c0_2 = arith.constant 0 : index
    %2 = vector.load %arg1[%c0_1, %c0_2] : memref<1x128xf32, #tpu.memory_space<vmem>>, vector<1x128xf32>
    tpu.vector_store %arg1[%c0_1, %c0_2], %1 {strides = array<i32>} : memref<1x128xf32, #tpu.memory_space<vmem>>, vector<1x128xf32>,
    return
  }
}

</mosaic_0001>

<bundles_post_ra>
// kernel: tpu_custom_call.1
= control target key start
LH: loop header
LB: loop body
LE: loop exit
PB: predicated region body
PF: predicated region fallthrough
CT: control target
= control target key end

     0   :  { %6 = vsyncpa [#allocation3], 0  ;;  %s128_s0 = inlined_call_operand.hbm [shape: f32[1,128], index: 0, kind: input, shape index: {}]   ;;  %s129_s1 = inlined_call_operand.hbm [shape: f32[1,128], index: 1, kind: output, shape index: {}]  }
   0x1   :  { %7 = vsyncpa [#allocation4], 0  ;;  %s91_s6 = smov [#allocation2]   ;;  %s43_s10 = scalar_lea.hbm %s128_s0, 16 }
   0x2   :  { %s14_s7 = sshll.u32 %s91_s6, 4  ;;  %p44_p0 = scmp.ne.s32.totalorder %s128_s0, %s43_s10  ;;  %s15_s7 = int_to_ptr.vmem [resolvable:$true] %s14_s7 }
   0x3   :  { %p47_p1 = scmp.lt.u32.totalorder %s43_s10, %s128_s0 }
   0x5   :  { %p49_p2 = pnand %p47_p1, %p44_p0 }
   0x7   :  { %52 = shalt.err (!%p49_p2)
}
   0x8   :  { %s53_s15 = scalar_lea.vmem %s15_s7, 16  ;;  %s57_s16 = scalar_lea.vmem %s15_s7, 32 }
   0x9   :  { %p54_p3 = scmp.ne.s32.totalorder %s15_s7, %s53_s15  ;;  %p58_p4 = scmp.lt.s32.totalorder %s15_s7, %s15_s7 }
   0xa   :  { %p59_p5 = scmp.lt.s32.totalorder %s57_s16, %s53_s15 }
   0xc   :  { %p60_p6 = por %p59_p5, %p58_p4 }
   0xe   :  { %p61_p7 = pnand %p60_p6, %p54_p3 }
  0x10   :  { %64 = shalt.err (!%p61_p7)
}
  0x11   :  { %17 = dma.hbm_to_vmem [thread:$0]  %s128_s0, 16, %s15_s7, [#allocation3]  }
  0x12   :  { %87 = dma.done.wait [#allocation3], 16  }
  0x13   :  { %88 = vsyncadd [#allocation3], 4294967280  ;;  %v21_v0 = vld [vmem:[#allocation2] sm:$0x1]  ;;  %s92_s19 = smov 1   ;;  %s93_s20 = smov [#allocation5]  }
  0x14   :  { %22 = vrot.lane.b32.xlu0 %v21_v0, %s92_s19  ;;  %s31_s21 = sshll.u32 %s93_s20, 4  ;;  %s32_s21 = int_to_ptr.vmem [resolvable:$true] %s31_s21 }
  0x15   :  { %s65_s22 = scalar_lea.vmem %s32_s21, 16  ;;  %s69_s23 = scalar_lea.vmem %s32_s21, 32 }
  0x16   :  { %p66_p8 = scmp.ne.s32.totalorder %s32_s21, %s65_s22  ;;  %p70_p9 = scmp.lt.s32.totalorder %s32_s21, %s32_s21 }
  0x17   :  { %p71_p10 = scmp.lt.s32.totalorder %s69_s23, %s65_s22 }
  0x19   :  { %p72_p11 = por %p71_p10, %p70_p9 }
  0x1b   :  { %p73_p12 = pnand %p72_p11, %p66_p8 }
  0x86   :  { %v23_v1 = vpop.permute.xlu0 %22 }
  0x87   :  { %24 = vst [vmem:[#allocation5] sm:$0x1] %v23_v1 }
  0x88   :  { %76 = shalt.err (!%p73_p12)
}
  0x89   :  { %s77_s25 = scalar_lea.hbm %s129_s1, 16 }
  0x8a   :  { %p78_p13 = scmp.ne.s32.totalorder %s129_s1, %s77_s25  ;;  %p81_p0 = scmp.lt.u32.totalorder %s77_s25, %s129_s1 }
  0x8c   :  { %p83_p1 = pnand %p81_p0, %p78_p13 }
  0x8e   :  { %86 = shalt.err (!%p83_p1)
}
  0x8f   :  { %34 = dma.vmem_to_hbm [thread:$0]  %s32_s21, 16, %s129_s1, [#allocation4]  }
  0x90   :  { %89 = dma.done.wait [#allocation4], 16  }
  0x91   :  { %90 = vsyncadd [#allocation4], 4294967280 }
  0x92   :  { %38 = vsyncpa [#allocation3], 1 }
  0x93   :  { %39 = vsyncpa [#allocation4], 1 }

</bundles_post_ra>
